<compile_context>
chip_gen: v7x
topology: tpu7x:2x2x1
jax: 0.10.0
libtpu: 0.0.40
codegen_flags: <defaults>
</compile_context>

<pallas_src>
import numpy as np

import jax
import jax.numpy as jnp
from jax.experimental import pallas as pl
from jax.experimental.pallas import tpu as pltpu


# ----------------------------------------------------------------------------
# Module configuration (the `args` dict of the PyTorch __init__).
# ----------------------------------------------------------------------------
ARGS = dict(sample_rate=16000, win_length=16, hop_length=8, n_fft=256, n_mels=32)
EPSILON = 1e-6
LOG_MEL = True            # module default
LOCAL_CEP_MVN = False     # module default

N_FFT = ARGS["n_fft"]
N_MELS = ARGS["n_mels"]
N_FREQS = N_FFT // 2 + 1          # 129 one-sided rfft bins
NFP = 128                         # kept bins 1..128 (DC dropped; Nyquist weight is 0)
FRAME_TILE = 1024                 # frames per grid step (sweep 512/1024/2048)

# bf16 matmul inputs (MXU-native, halves DMA bytes); accumulation stays f32.
# Set to jnp.float32 for bit-closest parity with the torchaudio reference.
MATMUL_DTYPE = jnp.bfloat16


def _round_up(x: int, m: int) -> int:
    return ((x + m - 1) // m) * m


# ----------------------------------------------------------------------------
# Deterministic parameter construction (window folded into DFT, mel filterbank).
# ----------------------------------------------------------------------------
def _hamming_window(win_length: int) -> np.ndarray:
    # torch.hamming_window(win_length), periodic=True
    n = np.arange(win_length, dtype=np.float64)
    return 0.54 - 0.46 * np.cos(2.0 * np.pi * n / win_length)


def _hz_to_mel(f):
    return 2595.0 * np.log10(1.0 + np.asarray(f, dtype=np.float64) / 700.0)


def _mel_to_hz(m):
    return 700.0 * (10.0 ** (np.asarray(m, dtype=np.float64) / 2595.0) - 1.0)


def _melscale_fbanks(n_freqs, f_min, f_max, n_mels, sample_rate) -> np.ndarray:
    # torchaudio.functional.melscale_fbanks, mel_scale='htk', norm=None
    all_freqs = np.linspace(0, sample_rate // 2, n_freqs)
    m_pts = np.linspace(_hz_to_mel(f_min), _hz_to_mel(f_max), n_mels + 2)
    f_pts = _mel_to_hz(m_pts)
    f_diff = f_pts[1:] - f_pts[:-1]                       # (n_mels + 1,)
    slopes = f_pts[None, :] - all_freqs[:, None]          # (n_freqs, n_mels + 2)
    down = -slopes[:, :-2] / f_diff[:-1]
    up = slopes[:, 2:] / f_diff[1:]
    return np.maximum(0.0, np.minimum(down, up)).astype(np.float64)   # (n_freqs, n_mels)


def _windowed_dft_matrix(n_fft: int, win_length: int) -> np.ndarray:
    """Fused [window*cos | -window*sin] one-sided DFT for bins 1..NFP, (n_fft, 2*NFP)."""
    window = _hamming_window(win_length)
    left = (n_fft - win_length) // 2                      # torch.stft centers the window
    win_full = np.zeros((n_fft,), dtype=np.float64)
    win_full[left:left + win_length] = window

    n = np.arange(n_fft, dtype=np.float64)[:, None]
    k = np.arange(1, NFP + 1, dtype=np.float64)[None, :]  # bins 1..128 (DC dropped)
    ang = 2.0 * np.pi * n * k / n_fft
    cos_m = win_full[:, None] * np.cos(ang)               # (n_fft, NFP)
    sin_m = -win_full[:, None] * np.sin(ang)
    return np.concatenate([cos_m, sin_m], axis=1).astype(np.float32)   # (n_fft, 2*NFP)


# ----------------------------------------------------------------------------
# Pallas kernel: (ft+extra, hop) chunk rows -> (ft, n_mels) log-mel
# ----------------------------------------------------------------------------
def _mel_kernel(tiles_ref, dft_ref, fb_ref, out_ref):
    hop = tiles_ref.shape[1]
    n_fft = dft_ref.shape[0]
    nfp = fb_ref.shape[0]
    ft = out_ref.shape[0]
    r = n_fft // hop                                       # chunks per frame (2 here)

    # In-VMEM framing: frame j = [chunk j | chunk j+1 | ...]; the row-shifted
    # slices are a cheap sublane relayout, the lane concat is ~free.
    frames = jnp.concatenate([tiles_ref[j:j + ft, :] for j in range(r)], axis=-1)

    # Single MXU matmul for real+imag DFT (Hamming window folded into dft_ref).
    ri = jnp.dot(frames, dft_ref[...], preferred_element_type=jnp.float32)   # (ft, 2*nfp)
    re = ri[:, :nfp]
    im = ri[:, nfp:]
    power = re * re + im * im                              # power spectrogram (f32, VPU)

    mel = jnp.dot(power.astype(fb_ref.dtype), fb_ref[...],
                  preferred_element_type=jnp.float32)      # (ft, n_mels)
    if LOG_MEL:
        mel = jnp.log(mel + EPSILON)
    if LOCAL_CEP_MVN:
        # torch .std is unbiased (ddof=1); std floored at 1e-3
        mean = jnp.mean(mel, axis=-1, keepdims=True)
        var = jnp.sum((mel - mean) ** 2, axis=-1, keepdims=True) / (mel.shape[-1] - 1)
        std = jnp.maximum(jnp.sqrt(var), 0.001)
        mel = (mel - mean) / std
    out_ref[...] = mel


# ----------------------------------------------------------------------------
# Wrapper: reflect pad, hop-chunking (no frames materialization), pallas_call.
# ----------------------------------------------------------------------------
@jax.jit
def mel_spectrogram(x: jax.Array) -> jax.Array:
    """Equivalent of MelSpectrogram(args).forward(x) with default flags."""
    sr = ARGS["sample_rate"]
    n_fft = N_FFT
    n_mels = N_MELS
    # Integer math matches the torch int() expression for this config (256 / 128).
    win_length = (sr * ARGS["win_length"]) // 1000
    hop = (sr * ARGS["hop_length"]) // 1000
    # TODO(synk): the chunked in-kernel framing assumes hop divides n_fft
    # (true here); a strided-DMA path would be needed otherwise.
    assert n_fft % hop == 0
    r = n_fft // hop

    # Trace-time weight construction.  Dropping the DC bin (and padding with the
    # zero-weight Nyquist bin) is exact only because its mel weight is 0.
    fb_full = _melscale_fbanks(N_FREQS, 0.0, float(sr // 2), n_mels, sr)
    assert float(np.max(np.abs(fb_full[0]))) < 1e-6          # DC row really is zero
    fb = jnp.asarray(fb_full[1:1 + NFP, :], dtype=MATMUL_DTYPE)          # (128, 32)
    dft_w = jnp.asarray(_windowed_dft_matrix(n_fft, win_length), dtype=MATMUL_DTYPE)

    B, time = x.shape
    n_frames = 1 + time // hop

    # torch.stft semantics: center=True, pad_mode='reflect'.  Cast to the matmul
    # dtype before padding so every framing intermediate is half-size.
    pad = n_fft // 2
    xp = jnp.pad(x.astype(MATMUL_DTYPE), ((0, 0), (pad, pad)), mode="reflect")

    # Hop-sized chunk rows (~1x audio); frames are rebuilt inside the kernel.
    n_chunks = n_frames + r - 1
    chunks = xp[:, :n_chunks * hop].reshape(B, n_chunks, hop)

    # Adaptive frame tile: big for long audio, shrinks for short clips so the
    # grid keeps >= B parallel steps (v7x megacore).
    ft = min(FRAME_TILE, _round_up(n_frames, 8))
    n_tiles = -(-n_frames // ft)
    extra = _round_up(r - 1, 8)                 # overlap rows per tile, sublane-padded
    rows_needed = n_tiles * ft + extra
    chunks = jnp.pad(chunks, ((0, 0), (0, rows_needed - n_chunks), (0, 0)))

    # Per-tile chunk blocks with the (r-1)-row overlap appended (pure Blocked specs).
    cmain = chunks[:, :n_tiles * ft].reshape(B, n_tiles, ft, hop)
    ctail = chunks[:, n_tiles * ft:].reshape(B, 1, extra, hop)
    cextra = jnp.concatenate([cmain[:, 1:, :extra, :], ctail], axis=1)   # (B, nt, extra, hop)
    tiles = jnp.concatenate([cmain, cextra], axis=2)                     # (B, nt, ft+extra, hop)
    tiles = tiles.reshape(B * n_tiles * (ft + extra), hop)

    out_flat = pl.pallas_call(
        _mel_kernel,
        out_shape=jax.ShapeDtypeStruct((B * n_tiles * ft, n_mels), jnp.float32),
        grid_spec=pltpu.PrefetchScalarGridSpec(
            num_scalar_prefetch=0,
            grid=(B * n_tiles,),
            in_specs=[
                pl.BlockSpec((ft + extra, hop), lambda m: (m, 0)),
                # Constant index maps: DFT + mel weights stay resident in VMEM.
                pl.BlockSpec((n_fft, 2 * NFP), lambda m: (0, 0)),
                pl.BlockSpec((NFP, n_mels), lambda m: (0, 0)),
            ],
            out_specs=pl.BlockSpec((ft, n_mels), lambda m: (m, 0)),
        ),
        compiler_params=pltpu.CompilerParams(dimension_semantics=("parallel",)),
    )(tiles, dft_w, fb)

    out = out_flat.reshape(B, n_tiles * ft, n_mels)[:, :n_frames, :]
    return out


if __name__ == "__main__":
    key = jax.random.PRNGKey(0)
    B = 2
    hop = (ARGS["sample_rate"] * ARGS["hop_length"]) // 1000      # 128
    time = 300 * hop                                              # -> 301 frames/batch
    x = jax.random.normal(key, (B, time), dtype=jnp.float32)

    y = jax.block_until_ready(mel_spectrogram(x))

    n_frames = 1 + time // hop
    assert y.shape == (B, n_frames, ARGS["n_mels"]), y.shape
    assert bool(jnp.all(jnp.isfinite(y)))
    print("KERNEL_OK")
</pallas_src>

<mosaic_0001>
module attributes {stable_mosaic.version = 11 : i64} {
  func.func @_mel_kernel(%arg0: i32, %arg1: memref<312x128xbf16, #tpu.memory_space<vmem>>, %arg2: memref<256x256xbf16, #tpu.memory_space<vmem>>, %arg3: memref<128x32xbf16, #tpu.memory_space<vmem>>, %arg4: memref<304x32xf32, #tpu.memory_space<vmem>>) attributes {dimension_semantics = [#tpu.dimension_semantics<parallel>], iteration_bounds = array<i64: 2>, scalar_prefetch = 0 : i64, scratch_operands = 0 : i64, tpu.core_type = #tpu.core_type<tc>, window_params = [{transform_indices = @transform_0, window_bounds = array<i64: 312, 128>}, {pipeline_mode = #tpu.pipeline_mode<synchronous>, transform_indices = @transform_1, window_bounds = array<i64: 256, 256>}, {pipeline_mode = #tpu.pipeline_mode<synchronous>, transform_indices = @transform_2, window_bounds = array<i64: 128, 32>}, {transform_indices = @transform_3, window_bounds = array<i64: 304, 32>}]} {
    %c0 = arith.constant 0 : index
    %c0_0 = arith.constant 0 : index
    %0 = vector.load %arg1[%c0, %c0_0] : memref<312x128xbf16, #tpu.memory_space<vmem>>, vector<304x128xbf16>
    %c1 = arith.constant 1 : index
    %c0_1 = arith.constant 0 : index
    %1 = vector.load %arg1[%c1, %c0_1] : memref<312x128xbf16, #tpu.memory_space<vmem>>, vector<304x128xbf16>
    %2 = tpu.concatenate %0, %1 in 1 : vector<304x128xbf16>, vector<304x128xbf16> -> vector<304x256xbf16>
    %c0_2 = arith.constant 0 : index
    %c0_3 = arith.constant 0 : index
    %3 = vector.load %arg2[%c0_2, %c0_3] : memref<256x256xbf16, #tpu.memory_space<vmem>>, vector<256x256xbf16>
    %cst = arith.constant dense<0.000000e+00> : vector<304x256xf32>
    %4 = tpu.matmul %2, %3, %cst {dimension_numbers = #tpu.dot_dimension_numbers<[1], [0], [0], [1], [0, 0, 1, 1], [], []>} : vector<304x256xbf16>, vector<256x256xbf16>, vector<304x256xf32> -> vector<304x256xf32>
    %5 = vector.extract_strided_slice %4 {offsets = [0, 0], sizes = [304, 128], strides = [1, 1]} : vector<304x256xf32> to vector<304x128xf32>
    %6 = vector.extract_strided_slice %4 {offsets = [0, 128], sizes = [304, 128], strides = [1, 1]} : vector<304x256xf32> to vector<304x128xf32>
    %7 = arith.mulf %5, %5 : vector<304x128xf32>
    %8 = arith.mulf %6, %6 : vector<304x128xf32>
    %9 = arith.addf %7, %8 : vector<304x128xf32>
    %10 = arith.truncf %9 : vector<304x128xf32> to vector<304x128xbf16>
    %c0_4 = arith.constant 0 : index
    %c0_5 = arith.constant 0 : index
    %11 = vector.load %arg3[%c0_4, %c0_5] : memref<128x32xbf16, #tpu.memory_space<vmem>>, vector<128x32xbf16>
    %cst_6 = arith.constant dense<0.000000e+00> : vector<304x32xf32>
    %12 = tpu.matmul %10, %11, %cst_6 {dimension_numbers = #tpu.dot_dimension_numbers<[1], [0], [0], [1], [0, 0, 1, 1], [], []>} : vector<304x128xbf16>, vector<128x32xbf16>, vector<304x32xf32> -> vector<304x32xf32>
    %cst_7 = arith.constant 9.99999997E-7 : f32
    %13 = vector.broadcast %cst_7 : f32 to vector<304x32xf32>
    %14 = arith.addf %12, %13 : vector<304x32xf32>
    %15 = math.log %14 : vector<304x32xf32>
    %c0_8 = arith.constant 0 : index
    %c0_9 = arith.constant 0 : index
    %16 = vector.load %arg4[%c0_8, %c0_9] : memref<304x32xf32, #tpu.memory_space<vmem>>, vector<304x32xf32>
    tpu.vector_store %arg4[%c0_8, %c0_9], %15 {strides = array<i32>} : memref<304x32xf32, #tpu.memory_space<vmem>>, vector<304x32xf32>,
    return
  }
  func.func @transform_0(%arg0: i32) -> (i32, i32) {
    %c0_i32 = arith.constant 0 : i32
    %c0_i32_0 = arith.constant 0 : i32
    return %arg0, %c0_i32 : i32, i32
  }
  func.func @transform_1(%arg0: i32) -> (i32, i32) {
    %c0_i32 = arith.constant 0 : i32
    %c0_i32_0 = arith.constant 0 : i32
    %c0_i32_1 = arith.constant 0 : i32
    return %c0_i32, %c0_i32_0 : i32, i32
  }
  func.func @transform_2(%arg0: i32) -> (i32, i32) {
    %c0_i32 = arith.constant 0 : i32
    %c0_i32_0 = arith.constant 0 : i32
    %c0_i32_1 = arith.constant 0 : i32
    return %c0_i32, %c0_i32_0 : i32, i32
  }
  func.func @transform_3(%arg0: i32) -> (i32, i32) {
    %c0_i32 = arith.constant 0 : i32
    %c0_i32_0 = arith.constant 0 : i32
    return %arg0, %c0_i32 : i32, i32
  }
}

</mosaic_0001>

<bundles_post_ra>
// kernel: mel_spectrogram.1
= control target key start
LH: loop header
LB: loop body
LE: loop exit
PB: predicated region body
PF: predicated region fallthrough
CT: control target
= control target key end

     0   :  { %s2026_s12 = smov 0   ;;  %s2409_s0 = inlined_call_operand.vmem [shape: bf16[624,128], index: 0, kind: input, shape index: {}]   ;;  %s2410_s1 = inlined_call_operand.vmem [shape: bf16[256,256], index: 1, kind: input, shape index: {}]   ;;  %s2411_s2 = inlined_call_operand.vmem [shape: bf16[128,32], index: 2, kind: input, shape index: {}]   ;;  %s2412_s3 = inlined_call_operand.vmem [shape: f32[608,32], index: 3, kind: output, shape index: {}]  }
   0x1 LB: > { %s1608_s13 = sadd.s32 4294967295, %s2002_s12   ;;  %p1612_p0 = scmp.ge.s32.totalorder %s2002_s12, 1  ;;  %s2002_s12 = sphi %s2026_s12, %s13_s12  }
   0x2   : > { %p138_p1 = scmp.lt.s32.totalorder %s2002_s12, 3 }
   0x4   : > { %p139_p2 = pnand %p1612_p0, %p138_p1 }
   0x5   : > { %v1825_v0 = vld [vmem:[%s2410_s1 + $0x4] ss:$8 sps:$4 sm:$0xff] (!%p139_p2)   ;;  %v1827_v1 = vld [vmem:[%s2410_s1] ss:$8 sps:$4 sm:$0xff] (!%p139_p2)   ;;  %v1828_v2 = vld [vmem:[%s2410_s1 + $0x14] ss:$8 sps:$4 sm:$0xff] (!%p139_p2)  }
   0x6   : > { %142 = sbr.rel (%p139_p2) target bundleno = 665 (0x299), region = 32  ;;  %832 = vmatprep.subr.bf16.mxu0 (!%p139_p2), %v1825_v0  ;;  %v1830_v3 = vld [vmem:[%s2410_s1 + $0x10] ss:$8 sps:$4 sm:$0xff] (!%p139_p2)   ;;  %v1831_v4 = vld [vmem:[%s2410_s1 + $0x24] ss:$8 sps:$4 sm:$0xff] (!%p139_p2)   ;;  %vm2005_vm1 = vmmov (!%p139_p2), 0  }
   0x7   : > { %833 = vmatpush1.bf16.msra.mxu0 (!%p139_p2), %v1827_v1  ;;  %s162_s24 = smul.u32 (!%p139_p2), 39, %s1608_s13  ;;  %v1833_v5 = vld [vmem:[%s2410_s1 + $0x20] ss:$8 sps:$4 sm:$0xff] (!%p139_p2)   ;;  %v1834_v6 = vld [vmem:[%s2410_s1 + $0x34] ss:$8 sps:$4 sm:$0xff] (!%p139_p2)   ;;  %vm1513_vm2 = vcmask (!%p139_p2), 261120  }
   0x8   : > { %834 = vmatprep.subr.bf16.mxu0 (!%p139_p2), %v1828_v2  ;;  %v1836_v7 = vld [vmem:[%s2410_s1 + $0x30] ss:$8 sps:$4 sm:$0xff] (!%p139_p2)   ;;  %v1837_v8 = vld [vmem:[%s2410_s1 + $0x44] ss:$8 sps:$4 sm:$0xff] (!%p139_p2)   ;;  %v1839_v9 = vld [vmem:[%s2410_s1 + $0x40] ss:$8 sps:$4 sm:$0xff] (!%p139_p2)  }
   0x9   : > { %p163_p3 = scmp.lt.s32.totalorder (!%p139_p2), %s162_s24, 77  ;;  %v1840_v10 = vld [vmem:[%s2410_s1 + $0x54] ss:$8 sps:$4 sm:$0xff] (!%p139_p2)   ;;  %v1842_v11 = vld [vmem:[%s2410_s1 + $0x50] ss:$8 sps:$4 sm:$0xff] (!%p139_p2)  }
   0xa   : > { %v1843_v12 = vld [vmem:[%s2410_s1 + $0x64] ss:$8 sps:$4 sm:$0xff] (!%p139_p2)   ;;  %vm464_vm0 = vsmask.f32 (!%p139_p2), 7424  ;;  %v1845_v13 = vld [vmem:[%s2410_s1 + $0x60] ss:$8 sps:$4 sm:$0xff] (!%p139_p2)  }
   0xb   : > { %835 = vmatpush1.bf16.msra.mxu0 (!%p139_p2), %v1830_v3  ;;  %v1846_v16 = vld [vmem:[%s2410_s1 + $0x74] ss:$8 sps:$4 sm:$0xff] (!%p139_p2)   ;;  %v1848_v20 = vld [vmem:[%s2410_s1 + $0x70] ss:$8 sps:$4 sm:$0xff] (!%p139_p2)   ;;  %v1849_v23 = vld [vmem:[%s2410_s1 + $0x84] ss:$8 sps:$4 sm:$0xff] (!%p139_p2)  }
   0xc   : > { %836 = vmatprep.subr.bf16.mxu0 (!%p139_p2), %v1831_v4  ;;  %v1851_v26 = vld [vmem:[%s2410_s1 + $0x80] ss:$8 sps:$4 sm:$0xff] (!%p139_p2)   ;;  %v1852_v27 = vld [vmem:[%s2410_s1 + $0x94] ss:$8 sps:$4 sm:$0xff] (!%p139_p2)   ;;  %v1854_v29 = vld [vmem:[%s2410_s1 + $0x90] ss:$8 sps:$4 sm:$0xff] (!%p139_p2)  }
   0xd   : > { %s2414_s24 = smov (!%p163_p3, %s162_s24), 77  ;;  %v1855_v33 = vld [vmem:[%s2410_s1 + $0xa4] ss:$8 sps:$4 sm:$0xff]   ;;  %v1857_v37 = vld [vmem:[%s2410_s1 + $0xa0] ss:$8 sps:$4 sm:$0xff]  }
   0xe   : > { %s1613_s10 = sshll.u32 %s2414_s24, 2  ;;  %v1858_v40 = vld [vmem:[%s2410_s1 + $0xb4] ss:$8 sps:$4 sm:$0xff]   ;;  %v1860_v49 = vld [vmem:[%s2410_s1 + $0xb0] ss:$8 sps:$4 sm:$0xff]  }
   0xf   : > { %837 = vmatpush1.bf16.msra.mxu0 %v1833_v5  ;;  %s2075_s17 = scalar_lea.vmem %s2409_s0, %s1613_s10  ;;  %v1861_v53 = vld [vmem:[%s2410_s1 + $0xc4] ss:$8 sps:$4 sm:$0xff]   ;;  %v1863_v61 = vld [vmem:[%s2410_s1 + $0xc0] ss:$8 sps:$4 sm:$0xff]   ;;  %v1864_v2 = vld [vmem:[%s2410_s1 + $0xd4] ss:$8 sps:$4 sm:$0xff]  }
  0x10   : > { %838 = vmatprep.subr.bf16.mxu0 %v1834_v6  ;;  %v1873_v14 = vld [vmem:[%s2075_s17] sm:$0xff]   ;;  %v2085_v15 = vld [vmem:[%s2075_s17 + $0x8] sm:$0xff]   ;;  %v1884_v31 = vld [vmem:[%s2075_s17 + $0x30] sm:$0xff]  }
  0x11   : > { %v466_v17 = vshrl.u32 %v1873_v14, 16  ;;  %v468_v18 = vshll.u32 %v1873_v14, 16  ;;  %v473_v19 = vshll.u32 %v2085_v15, 16  ;;  %v1882_v28 = vld [vmem:[%s2075_s17 + $0x28] sm:$0xff]   ;;  %v513_v35 = vshll.u32 %v1884_v31, 16  ;;  %v1886_v36 = vld [vmem:[%s2075_s17 + $0x38] sm:$0xff]  }
  0x12   : > { %v505_v30 = vshll.u32 %v1882_v28, 16  ;;  %v509_v32 = vshrl.u32 %v1882_v28, 16  ;;  %v517_v38 = vshrl.u32 %v1884_v31, 16  ;;  %v1888_v39 = vld [vmem:[%s2075_s17 + $0x40] sm:$0xff]   ;;  %v521_v43 = vshll.u32 %v1886_v36, 16  ;;  %v1890_v51 = vld [vmem:[%s2075_s17 + $0x48] sm:$0xff]  }
  0x13   : > { %839 = vmatpush1.bf16.msra.mxu0 %v1836_v7  ;;  %v470_v21 = vrot.slane %v468_v18, 1  ;;  %v2094_v22 = vrot.slane %v473_v19, 1  ;;  %v515_v42 = vrot.slane %v513_v35, 1  ;;  %v525_v44 = vshrl.u32 %v1886_v36, 16  ;;  %v1892_v58 = vld [vmem:[%s2075_s17 + $0x50] sm:$0xff]   ;;  %v1894_v0 = vld [vmem:[%s2075_s17 + $0x58] sm:$0xff]  }
  0x14   : > { %840 = vmatprep.subr.bf16.mxu0 %v1837_v8  ;;  %v2115_v34 = vrot.slane %v505_v30, 1  ;;  %v529_v45 = vshll.u32 %v1888_v39, 16  ;;  %v523_v48 = vrot.slane %v521_v43, 1  ;;  %v533_v52 = vshrl.u32 %v1888_v39, 16  ;;  %v1896_v7 = vld [vmem:[%s2075_s17 + $0x60] sm:$0xff]   ;;  %v2155_v8 = vld [vmem:[%s2075_s17 + $0x10] sm:$0xff]  }
  0x15   : > { %v471_v24 = vor.u32 %v470_v21, %v466_v17  ;;  %v519_v47 = vor.u32 %v517_v38, %v515_v42  ;;  %v537_v57 = vshll.u32 %v1890_v51, 16  ;;  %v541_v59 = vshrl.u32 %v1890_v51, 16  ;;  %v1867_v17 = vld [vmem:[%s2410_s1 + $0xe4] ss:$8 sps:$4 sm:$0xff]   ;;  %v1869_v28 = vld [vmem:[%s2410_s1 + $0xe0] ss:$8 sps:$4 sm:$0xff]  }
  0x16   : > { %v511_v41 = vor.u32 %v509_v32, %v2115_v34  ;;  %v531_v50 = vrot.slane %v529_v45, 1  ;;  %v527_v55 = vor.u32 %v525_v44, %v523_v48  ;;  %v545_v63 = vshll.u32 %v1892_v58, 16  ;;  %v1870_v31 = vld [vmem:[%s2410_s1 + $0xf4] ss:$8 sps:$4 sm:$0xff]  }
  0x17   : > { %841 = vmatpush1.bf16.msra.mxu0 %v1839_v9  ;;  %v476_v25 = vsel %vm464_vm0, %v471_v24, %v2094_v22  ;;  %v2137_v54 = vsel %vm464_vm0, %v519_v47, %v523_v48  ;;  %v539_v62 = vrot.slane %v537_v57, 1  ;;  %v549_v1 = vshrl.u32 %v1892_v58, 16  ;;  %v1902_v35 = vld [vmem:[%s2075_s17 + $0x78] sm:$0xff]  }
  0x18   : > { %842 = vmatprep.subr.bf16.mxu0 %v1840_v10  ;;  %864 = vmatprep.mubr.bf16.mxu0 %v476_v25  ;;  %v2127_v46 = vsel %vm464_vm0, %v511_v41, %v515_v42  ;;  %v535_v56 = vor.u32 %v533_v52, %v531_v50  ;;  %v2141_v60 = vsel %vm464_vm0, %v527_v55, %v531_v50  ;;  %v547_v5 = vrot.slane %v545_v63, 1  ;;  %v1898_v10 = vld [vmem:[%s2075_s17 + $0x68] sm:$0xff]   ;;  %v1872_v42 = vld [vmem:[%s2410_s1 + $0xf0] ss:$8 sps:$4 sm:$0xff]   ;;  %v1875_v55 = vld [vmem:[%s2075_s17] sm:$0xff]  }
  0x19   : > { %v543_v4 = vor.u32 %v541_v59, %v539_v62  ;;  %v553_v6 = vshll.u32 %v1894_v0, 16  ;;  %v557_v9 = vshrl.u32 %v1894_v0, 16  ;;  %v565_v18 = vshrl.u32 %v1896_v7, 16  ;;  %v1878_v44 = vld [vmem:[%s2075_s17 + $0x18] sm:$0xff]   ;;  %v1906_v50 = vld [vmem:[%s2075_s17 + $0x88] sm:$0xff]  }
  0x1a   : > { %v2151_v3 = vsel %vm464_vm0, %v535_v56, %v539_v62  ;;  %v569_v19 = vshll.u32 %v1898_v10, 16  ;;  %v477_v24 = vshrl.u32 %v2085_v15, 16  ;;  %v481_v32 = vshll.u32 %v2155_v8, 16 }
  0x1b   : > { %843 = vmatpush1.bf16.msra.mxu0 %v1842_v11  ;;  %v1866_v11 = vld [vmem:[%s2410_s1 + $0xd0] ss:$8 sps:$4 sm:$0xff]   ;;  %v555_v14 = vrot.slane %v553_v6, 1  ;;  %v585_v39 = vshll.u32 %v1902_v35, 16  ;;  %v589_v41 = vshrl.u32 %v1902_v35, 16  ;;  %v485_v43 = vshrl.u32 %v2155_v8, 16 }
  0x1c   : > { %844 = vmatprep.subr.bf16.mxu0 %v1843_v12  ;;  %v2162_v12 = vsel %vm464_vm0, %v543_v4, %v547_v5  ;;  %v571_v25 = vrot.slane %v569_v19, 1  ;;  %v479_v51 = vor.u32 %v477_v24, %v2094_v22  ;;  %v483_v52 = vrot.slane %v481_v32, 1  ;;  %v1912_v32 = vld [vmem:[%s2411_s2] sm:$0xff]   ;;  %v1913_v35 = vld [vmem:[%s2411_s2 + $0x8] sm:$0xff]  }
  0x1d   : > { %v559_v21 = vor.u32 %v557_v9, %v555_v14  ;;  %v587_v48 = vrot.slane %v585_v39, 1  ;;  %v601_v59 = vshll.u32 %v1906_v50, 16  ;;  %v605_v4 = vshrl.u32 %v1906_v50, 16  ;;  %v1914_v39 = vld [vmem:[%s2411_s2 + $0x10] sm:$0xff]   ;;  %v1907_v50 = vld [vmem:[%s2075_s17 + $0x80] sm:$0xff]  }
  0x1e   : > { %v484_v22 = vsel %vm464_vm0, %v479_v51, %v483_v52  ;;  %v487_v6 = vor.u32 %v485_v43, %v483_v52  ;;  %v1885_v43 = vld [vmem:[%s2075_s17 + $0x28] sm:$0xff]  }
  0x1f   : > { %845 = vmatpush1.bf16.msra.mxu0 %v1845_v13  ;;  %v551_v13 = vor.u32 %v549_v1, %v547_v5  ;;  %v591_v57 = vor.u32 %v589_v41, %v587_v48  ;;  %v603_v0 = vrot.slane %v601_v59, 1  ;;  %v1883_v41 = vld [vmem:[%s2075_s17 + $0x20] sm:$0xff]   ;;  %v1909_v51 = vld [vmem:[%s2075_s17 + $0x88] sm:$0xff]  }
  0x20   : > { %846 = vmatprep.subr.bf16.mxu0 %v1846_v16  ;;  %v561_v16 = vshll.u32 %v1896_v7, 16  ;;  %v1880_v7 = vld [vmem:[%s2075_s17 + $0x20] sm:$0xff]  }
  0x21   : > { %v607_v8 = vor.u32 %v605_v4, %v603_v0 }
  0x23   : > { %847 = vmatpush1.bf16.msra.mxu0 %v1848_v20  ;;  %v2168_v20 = vsel %vm464_vm0, %v551_v13, %v555_v14  ;;  %v493_v14 = vshrl.u32 %v1878_v44, 16 }
  0x24   : > { %848 = vmatprep.subr.bf16.mxu0 %v1849_v23  ;;  %v563_v23 = vrot.slane %v561_v16, 1  ;;  %v497_v16 = vshll.u32 %v1880_v7, 16 }
  0x26   : > { %v567_v30 = vor.u32 %v565_v18, %v563_v23  ;;  %v1910_v18 = vld [vmem:[%s2075_s17 + $0x98] ss:$0 sps:$4 sm:$0x11]  }
  0x27   : > { %849 = vmatpush1.bf16.msra.mxu0 %v1851_v26  ;;  %v1900_v26 = vld [vmem:[%s2075_s17 + $0x70] sm:$0xff]  }
  0x28   : > { %850 = vmatprep.subr.bf16.mxu0 %v1852_v27  ;;  %v573_v27 = vshrl.u32 %v1898_v10, 16  ;;  %v581_v36 = vshrl.u32 %v1900_v26, 16  ;;  %v1877_v10 = vld [vmem:[%s2075_s17 + $0x8] sm:$0xff]  }
  0x2a   : > { %v575_v15 = vor.u32 %v573_v27, %v571_v25 }
  0x2b   : > { %851 = vmatpush1.bf16.msra.mxu0 %v1854_v29  ;;  %v2176_v29 = vsel %vm464_vm0, %v559_v21, %v563_v23  ;;  %v499_v23 = vrot.slane %v497_v16, 1 }
  0x2c   : > { %852 = vmatprep.subr.bf16.mxu0 %v1855_v33  ;;  %v577_v33 = vshll.u32 %v1900_v26, 16  ;;  %v1879_v26 = vld [vmem:[%s2075_s17 + $0x10] sm:$0xff]  }
  0x2e   : > { %v579_v38 = vrot.slane %v577_v33, 1 }
  0x2f   : > { %853 = vmatpush1.bf16.msra.mxu0 %v1857_v37  ;;  %v2184_v37 = vsel %vm464_vm0, %v567_v30, %v571_v25  ;;  %v617_v25 = vshll.u32 %v1910_v18, 16  ;;  %v501_v30 = vshrl.u32 %v1880_v7, 16 }
  0x30   : > { %854 = vmatprep.subr.bf16.mxu0 %v1858_v40  ;;  %v1904_v40 = vld [vmem:[%s2075_s17 + $0x80] sm:$0xff]   ;;  %v2193_v45 = vsel %vm464_vm0, %v575_v15, %v579_v38  ;;  %v583_v47 = vor.u32 %v581_v36, %v579_v38  ;;  %v2004_v15 = vmov 0.0   ;;  %v1881_v36 = vld [vmem:[%s2075_s17 + $0x18] sm:$0xff]  }
  0x31   : > { %v619_v27 = vrot.slane %v617_v25, 1  ;;  %1723 = vmatprep.subr.bf16.mxu1 %v2004_v15  ;;  %v503_v33 = vor.u32 %v501_v30, %v499_v23  ;;  %1739 = vmatprep.mubr.msk.bf16.mxu1 %vm2005_vm1, %v2004_v15 }
  0x32   : > { %v2199_v56 = vsel %vm464_vm0, %v583_v47, %v587_v48  ;;  %1724 = vmatpush3.bf16.msra.mxu1 %v1912_v32  ;;  %v1891_v47 = vld [vmem:[%s2075_s17 + $0x40] sm:$0xff]   ;;  %v1893_v48 = vld [vmem:[%s2075_s17 + $0x48] sm:$0xff]  }
  0x33   : > { %855 = vmatpush1.bf16.msra.mxu0 %v1860_v49  ;;  %v593_v49 = vshll.u32 %v1904_v40, 16  ;;  %1725 = vmatprep.subr.bf16.mxu1 %v2004_v15  ;;  %v508_v38 = vsel %vm464_vm0, %v503_v33, %v2115_v34  ;;  %v1916_v34 = vld [vmem:[%s2411_s2 + $0x20] sm:$0xff]  }
  0x34   : > { %856 = vmatprep.subr.bf16.mxu0 %v1861_v53  ;;  %v597_v53 = vshrl.u32 %v1904_v40, 16  ;;  %v1915_v40 = vld [vmem:[%s2411_s2 + $0x18] sm:$0xff]  }
  0x35   : > { %v595_v58 = vrot.slane %v593_v49, 1  ;;  %v1895_v49 = vld [vmem:[%s2075_s17 + $0x50] sm:$0xff]  }
  0x36   : > { %1726 = vmatpush3.bf16.msra.mxu1 %v1913_v35 }
  0x37   : > { %857 = vmatpush1.bf16.msra.mxu0 %v1863_v61  ;;  %v489_v61 = vshll.u32 %v1878_v44, 16  ;;  %v2202_v62 = vsel %vm464_vm0, %v591_v57, %v595_v58  ;;  %v599_v63 = vor.u32 %v597_v53, %v595_v58  ;;  %1727 = vmatprep.subr.bf16.mxu1 %v2004_v15  ;;  %v1887_v44 = vld [vmem:[%s2075_s17 + $0x30] sm:$0xff]  }
  0x38   : > { %858 = vmatprep.subr.bf16.mxu0 %v1864_v2  ;;  %v1908_v2 = vld [vmem:[%s2075_s17 + $0x90] sm:$0xff]  }
  0x39   : > { %v2206_v1 = vsel %vm464_vm0, %v599_v63, %v603_v0  ;;  %v491_v5 = vrot.slane %v489_v61, 1  ;;  %v609_v9 = vshll.u32 %v1908_v2, 16  ;;  %v613_v19 = vshrl.u32 %v1908_v2, 16 }
  0x3a   : > { %1728 = vmatpush3.bf16.msra.mxu1 %v1914_v39 }
  0x3b   : > { %859 = vmatpush1.bf16.msra.mxu0 %v1866_v11  ;;  %v611_v11 = vrot.slane %v609_v9, 1  ;;  %v492_v13 = vsel %vm464_vm0, %v487_v6, %v491_v5  ;;  %v495_v21 = vor.u32 %v493_v14, %v491_v5  ;;  %1729 = vmatprep.subr.bf16.mxu1 %v2004_v15 }
  0x3c   : > { %860 = vmatprep.subr.bf16.mxu0 %v1867_v17 }
  0x3d   : > { %v2213_v17 = vsel %vm464_vm0, %v607_v8, %v611_v11  ;;  %v615_v24 = vor.u32 %v613_v19, %v611_v11 }
  0x3e   : > { %1730 = vmatpush3.bf16.msra.mxu1 %v1915_v40 }
  0x3f   : > { %861 = vmatpush1.bf16.msra.mxu0 %v1869_v28  ;;  %v500_v28 = vsel %vm464_vm0, %v495_v21, %v499_v23  ;;  %1731 = vmatprep.subr.bf16.mxu1 %v2004_v15 }
  0x40   : > { %862 = vmatprep.subr.bf16.mxu0 %v1870_v31  ;;  %v2219_v31 = vsel %vm464_vm0, %v615_v24, %v619_v27 }
  0x42   : > { %1732 = vmatpush3.bf16.msra.mxu1 %v1916_v34 }
  0x43   : > { %863 = vmatpush1.bf16.msra.mxu0 %v1872_v42  ;;  %v1917_v42 = vld [vmem:[%s2411_s2 + $0x28] sm:$0xff]   ;;  %1733 = vmatprep.subr.bf16.mxu1 %v2004_v15 }
  0x46   : > { %865 = vmatmul.mubr.bf16.vlgmr.msra.gmra.mrb[0].mxu0 %v1875_v55  ;;  %1734 = vmatpush3.bf16.msra.mxu1 %v1917_v42 }
  0x47   : > { %874 = vmatprep.mubr.bf16.mxu0 %v484_v22  ;;  %1735 = vmatprep.subr.bf16.mxu1 %v2004_v15 }
  0x4e   : > { %875 = vmatmul.mubr.bf16.gmra.mrb[4].mxu0 %v1877_v10 }
  0x4f   : > { %884 = vmatprep.mubr.bf16.mxu0 %v492_v13 }
  0x56   : > { %885 = vmatmul.mubr.bf16.gmra.mrb[8].mxu0 %v1879_v26 }
  0x57   : > { %894 = vmatprep.mubr.bf16.mxu0 %v500_v28 }
  0x5e   : > { %895 = vmatmul.mubr.bf16.gmra.mrb[12].mxu0 %v1881_v36 }
  0x5f   : > { %904 = vmatprep.mubr.bf16.mxu0 %v508_v38 }
  0x66   : > { %905 = vmatmul.mubr.bf16.gmra.mrb[16].mxu0 %v1883_v41 }
  0x67   : > { %914 = vmatprep.mubr.bf16.mxu0 %v2127_v46  ;;  %v1889_v46 = vld [vmem:[%s2075_s17 + $0x38] sm:$0xff]  }
  0x6e   : > { %915 = vmatmul.mubr.bf16.gmra.mrb[20].mxu0 %v1885_v43 }
  0x6f   : > { %924 = vmatprep.mubr.bf16.mxu0 %v2137_v54  ;;  %v1897_v54 = vld [vmem:[%s2075_s17 + $0x58] sm:$0xff]  }
  0x76   : > { %925 = vmatmul.mubr.bf16.gmra.mrb[24].mxu0 %v1887_v44 }
  0x77   : > { %934 = vmatprep.mubr.bf16.mxu0 %v2141_v60  ;;  %v1918_v60 = vld [vmem:[%s2411_s2 + $0x30] sm:$0xff]  }
  0x78   : > { %1736 = vmatpush3.bf16.msra.mxu1 %v1918_v60 }
  0x79   : > { %1737 = vmatprep.subr.bf16.mxu1 %v2004_v15 }
  0x7e   : > { %935 = vmatmul.mubr.bf16.gmra.mrb[28].mxu0 %v1889_v46 }
  0x7f   : > { %944 = vmatprep.mubr.bf16.mxu0 %v2151_v3  ;;  %v1919_v3 = vld [vmem:[%s2411_s2 + $0x38] sm:$0xff]  }
  0x80   : > { %1738 = vmatpush3.bf16.msra.mxu1 %v1919_v3 }
  0x86   : > { %945 = vmatmul.mubr.bf16.gmra.mrb[32].mxu0 %v1891_v47 }
  0x87   : > { %954 = vmatprep.mubr.bf16.mxu0 %v2162_v12  ;;  %v1899_v12 = vld [vmem:[%s2075_s17 + $0x60] sm:$0xff]  }
  0x8e   : > { %955 = vmatmul.mubr.bf16.gmra.mrb[36].mxu0 %v1893_v48 }
  0x8f   : > { %964 = vmatprep.mubr.bf16.mxu0 %v2168_v20  ;;  %v1901_v20 = vld [vmem:[%s2075_s17 + $0x68] sm:$0xff]  }
  0x96   : > { %965 = vmatmul.mubr.bf16.gmra.mrb[40].mxu0 %v1895_v49 }
  0x97   : > { %974 = vmatprep.mubr.bf16.mxu0 %v2176_v29  ;;  %v1903_v29 = vld [vmem:[%s2075_s17 + $0x70] sm:$0xff]  }
  0x9e   : > { %975 = vmatmul.mubr.bf16.gmra.mrb[44].mxu0 %v1897_v54 }
  0x9f   : > { %984 = vmatprep.mubr.bf16.mxu0 %v2184_v37  ;;  %v1905_v37 = vld [vmem:[%s2075_s17 + $0x78] sm:$0xff]  }
  0xa6   : > { %985 = vmatmul.mubr.bf16.gmra.mrb[48].mxu0 %v1899_v12 }
  0xa7   : > { %994 = vmatprep.mubr.bf16.mxu0 %v2193_v45  ;;  %v1911_v45 = vld [vmem:[%s2075_s17 + $0x90] sm:$0xff]   ;;  %s168_s17 = smul.u32 38, %s1608_s13 }
  0xa9   : > { %p169_p4 = scmp.lt.s32.totalorder %s168_s17, 75 }
  0xab   : > { %s2416_s17 = smov (!%p169_p4, %s168_s17), 75 }
  0xac   : > { %s1614_s26 = sshll.u32 %s2416_s17, 3 }
  0xad   : > { %s2328_s28 = scalar_lea.vmem %s2412_s3, %s1614_s26 }
  0xae   : > { %995 = vmatmul.mubr.bf16.gmra.mrb[52].mxu0 %v1901_v20 }
  0xaf   : > { %1004 = vmatprep.mubr.bf16.mxu0 %v2199_v56 }
  0xb6   : > { %1005 = vmatmul.mubr.bf16.gmra.mrb[56].mxu0 %v1903_v29 }
  0xb7   : > { %1014 = vmatprep.mubr.bf16.mxu0 %v2202_v62 }
  0xbe   : > { %1015 = vmatmul.mubr.bf16.gmra.mrb[60].mxu0 %v1905_v37 }
  0xbf   : > { %1024 = vmatprep.mubr.bf16.mxu0 %v2206_v1 }
  0xc6   : > { %1025 = vmatmul.mubr.bf16.gmra.mrb[64].mxu0 %v1907_v50 }
  0xc7   : > { %1034 = vmatprep.mubr.bf16.mxu0 %v2213_v17 }
  0xce   : > { %1035 = vmatmul.mubr.bf16.gmra.mrb[68].mxu0 %v1909_v51 }
  0xcf   : > { %1044 = vmatprep.mubr.bf16.mxu0 %v2219_v31 }
  0xd6   : > { %1045 = vmatmul.mubr.bf16.gmra.mrb[72].mxu0 %v1911_v45 }
 0x119   : > { %v866_v52 = vpop.f32.mrb[0].mxu0 }
 0x11a   : > { %v1055_v53 = vmul.f32 %v866_v52, %v866_v52  ;;  %v868_v55 = vpop.f32.mrb[1].mxu0 }
 0x11b   : > { %v1093_v56 = vmul.f32 %v868_v55, %v868_v55  ;;  %v870_v57 = vpop.f32.mrb[2].mxu0 }
 0x11c   : > { %v1056_v58 = vmul.f32 %v870_v57, %v870_v57  ;;  %v872_v59 = vpop.f32.mrb[3].mxu0 }
 0x11d   : > { %v1131_v61 = vadd.f32 %v1093_v56, %v1055_v53  ;;  %v1094_v62 = vmul.f32 %v872_v59, %v872_v59 }
 0x11f   : > { %v1132_v63 = vadd.f32 %v1094_v62, %v1056_v58 }
 0x121   : > { %v876_v0 = vpop.f32.mrb[4].mxu0  ;;  %v1169_v22 = vpack.c.bf16 %v1132_v63, %v1131_v61 }
 0x122   : > { %v1057_v1 = vmul.f32 %v876_v0, %v876_v0  ;;  %v878_v2 = vpop.f32.mrb[5].mxu0 }
 0x123   : > { %v1095_v4 = vmul.f32 %v878_v2, %v878_v2  ;;  %v880_v5 = vpop.f32.mrb[6].mxu0  ;;  %1740 = vmatmul.mubr.bf16.vlgmr.msra.gmra.mrb[0].mxu1 %v1169_v22 }
 0x124   : > { %v1058_v6 = vmul.f32 %v880_v5, %v880_v5  ;;  %v882_v7 = vpop.f32.mrb[7].mxu0  ;;  %1743 = vmatprep.mubr.msk.bf16.mxu1 %vm2005_vm1, %v2004_v15 }
 0x125   : > { %v1133_v8 = vadd.f32 %v1095_v4, %v1057_v1  ;;  %v1096_v9 = vmul.f32 %v882_v7, %v882_v7 }
 0x127   : > { %v1134_v10 = vadd.f32 %v1096_v9, %v1058_v6 }
 0x129   : > { %v886_v11 = vpop.f32.mrb[8].mxu0  ;;  %v1170_v13 = vpack.c.bf16 %v1134_v10, %v1133_v8 }
 0x12a   : > { %v1059_v14 = vmul.f32 %v886_v11, %v886_v11  ;;  %v888_v16 = vpop.f32.mrb[9].mxu0 }
 0x12b   : > { %v1097_v17 = vmul.f32 %v888_v16, %v888_v16  ;;  %v890_v18 = vpop.f32.mrb[10].mxu0  ;;  %1744 = vmatmul.mubr.bf16.gmra.mrb[4].mxu1 %v1170_v13 }
 0x12c   : > { %v1060_v19 = vmul.f32 %v890_v18, %v890_v18  ;;  %v892_v21 = vpop.f32.mrb[11].mxu0  ;;  %1747 = vmatprep.mubr.msk.bf16.mxu1 %vm2005_vm1, %v2004_v15 }
 0x12d   : > { %v1135_v23 = vadd.f32 %v1097_v17, %v1059_v14  ;;  %v1098_v24 = vmul.f32 %v892_v21, %v892_v21 }
 0x12f   : > { %v1136_v25 = vadd.f32 %v1098_v24, %v1060_v19 }
 0x131   : > { %v896_v26 = vpop.f32.mrb[12].mxu0  ;;  %v1171_v27 = vpack.c.bf16 %v1136_v25, %v1135_v23 }
 0x132   : > { %v1061_v28 = vmul.f32 %v896_v26, %v896_v26  ;;  %v898_v30 = vpop.f32.mrb[13].mxu0 }
 0x133   : > { %v1099_v31 = vmul.f32 %v898_v30, %v898_v30  ;;  %v900_v32 = vpop.f32.mrb[14].mxu0  ;;  %1748 = vmatmul.mubr.bf16.gmra.mrb[8].mxu1 %v1171_v27 }
 0x134   : > { %v1062_v33 = vmul.f32 %v900_v32, %v900_v32  ;;  %v902_v35 = vpop.f32.mrb[15].mxu0  ;;  %1751 = vmatprep.mubr.msk.bf16.mxu1 %vm2005_vm1, %v2004_v15 }
 0x135   : > { %v1137_v36 = vadd.f32 %v1099_v31, %v1061_v28  ;;  %v1100_v38 = vmul.f32 %v902_v35, %v902_v35 }
 0x137   : > { %v1138_v39 = vadd.f32 %v1100_v38, %v1062_v33 }
 0x139   : > { %v906_v40 = vpop.f32.mrb[16].mxu0  ;;  %v1172_v41 = vpack.c.bf16 %v1138_v39, %v1137_v36 }
 0x13a   : > { %v1063_v34 = vmul.f32 %v906_v40, %v906_v40  ;;  %v908_v42 = vpop.f32.mrb[17].mxu0 }
 0x13b   : > { %v1101_v43 = vmul.f32 %v908_v42, %v908_v42  ;;  %v910_v44 = vpop.f32.mrb[18].mxu0  ;;  %1752 = vmatmul.mubr.bf16.gmra.mrb[12].mxu1 %v1172_v41 }
 0x13c   : > { %v1064_v46 = vmul.f32 %v910_v44, %v910_v44  ;;  %v912_v47 = vpop.f32.mrb[19].mxu0  ;;  %1755 = vmatprep.mubr.msk.bf16.mxu1 %vm2005_vm1, %v2004_v15 }
 0x13d   : > { %v1139_v48 = vadd.f32 %v1101_v43, %v1063_v34  ;;  %v1102_v49 = vmul.f32 %v912_v47, %v912_v47 }
 0x13f   : > { %v1140_v54 = vadd.f32 %v1102_v49, %v1064_v46 }
 0x141   : > { %v916_v60 = vpop.f32.mrb[20].mxu0  ;;  %v1173_v3 = vpack.c.bf16 %v1140_v54, %v1139_v48 }
 0x142   : > { %v1065_v12 = vmul.f32 %v916_v60, %v916_v60  ;;  %v918_v20 = vpop.f32.mrb[21].mxu0 }
 0x143   : > { %v1103_v29 = vmul.f32 %v918_v20, %v918_v20  ;;  %v920_v37 = vpop.f32.mrb[22].mxu0  ;;  %1756 = vmatmul.mubr.bf16.gmra.mrb[16].mxu1 %v1173_v3 }
 0x144   : > { %v1066_v50 = vmul.f32 %v920_v37, %v920_v37  ;;  %v922_v51 = vpop.f32.mrb[23].mxu0  ;;  %1759 = vmatprep.mubr.msk.bf16.mxu1 %vm2005_vm1, %v2004_v15 }
 0x145   : > { %v1141_v45 = vadd.f32 %v1103_v29, %v1065_v12  ;;  %v1104_v52 = vmul.f32 %v922_v51, %v922_v51 }
 0x147   : > { %v1142_v53 = vadd.f32 %v1104_v52, %v1066_v50 }
 0x149   : > { %v926_v55 = vpop.f32.mrb[24].mxu0  ;;  %v1174_v56 = vpack.c.bf16 %v1142_v53, %v1141_v45 }
 0x14a   : > { %v1067_v57 = vmul.f32 %v926_v55, %v926_v55  ;;  %v928_v58 = vpop.f32.mrb[25].mxu0 }
 0x14b   : > { %v1105_v59 = vmul.f32 %v928_v58, %v928_v58  ;;  %v930_v61 = vpop.f32.mrb[26].mxu0  ;;  %1760 = vmatmul.mubr.bf16.gmra.mrb[20].mxu1 %v1174_v56 }
 0x14c   : > { %v1068_v62 = vmul.f32 %v930_v61, %v930_v61  ;;  %v932_v63 = vpop.f32.mrb[27].mxu0  ;;  %1763 = vmatprep.mubr.msk.bf16.mxu1 %vm2005_vm1, %v2004_v15 }
 0x14d   : > { %v1143_v0 = vadd.f32 %v1105_v59, %v1067_v57  ;;  %v1106_v22 = vmul.f32 %v932_v63, %v932_v63 }
 0x14f   : > { %v1144_v1 = vadd.f32 %v1106_v22, %v1068_v62 }
 0x151   : > { %v936_v2 = vpop.f32.mrb[28].mxu0  ;;  %v1175_v4 = vpack.c.bf16 %v1144_v1, %v1143_v0 }
 0x152   : > { %v1069_v5 = vmul.f32 %v936_v2, %v936_v2  ;;  %v938_v6 = vpop.f32.mrb[29].mxu0 }
 0x153   : > { %v1107_v7 = vmul.f32 %v938_v6, %v938_v6  ;;  %v940_v8 = vpop.f32.mrb[30].mxu0  ;;  %1764 = vmatmul.mubr.bf16.gmra.mrb[24].mxu1 %v1175_v4 }
 0x154   : > { %v1070_v9 = vmul.f32 %v940_v8, %v940_v8  ;;  %v942_v10 = vpop.f32.mrb[31].mxu0  ;;  %1767 = vmatprep.mubr.msk.bf16.mxu1 %vm2005_vm1, %v2004_v15 }
 0x155   : > { %v1145_v11 = vadd.f32 %v1107_v7, %v1069_v5  ;;  %v1108_v13 = vmul.f32 %v942_v10, %v942_v10 }
 0x157   : > { %v1146_v14 = vadd.f32 %v1108_v13, %v1070_v9 }
 0x159   : > { %v946_v16 = vpop.f32.mrb[32].mxu0  ;;  %v1176_v17 = vpack.c.bf16 %v1146_v14, %v1145_v11 }
 0x15a   : > { %v1071_v18 = vmul.f32 %v946_v16, %v946_v16  ;;  %v948_v19 = vpop.f32.mrb[33].mxu0 }
 0x15b   : > { %v1109_v21 = vmul.f32 %v948_v19, %v948_v19  ;;  %v950_v23 = vpop.f32.mrb[34].mxu0  ;;  %1768 = vmatmul.mubr.bf16.gmra.mrb[28].mxu1 %v1176_v17 }
 0x15c   : > { %v1072_v24 = vmul.f32 %v950_v23, %v950_v23  ;;  %v952_v25 = vpop.f32.mrb[35].mxu0  ;;  %1771 = vmatprep.mubr.msk.bf16.mxu1 %vm2005_vm1, %v2004_v15 }
 0x15d   : > { %v1147_v26 = vadd.f32 %v1109_v21, %v1071_v18  ;;  %v1110_v27 = vmul.f32 %v952_v25, %v952_v25 }
 0x15f   : > { %v1148_v28 = vadd.f32 %v1110_v27, %v1072_v24 }
 0x161   : > { %v956_v30 = vpop.f32.mrb[36].mxu0  ;;  %v1177_v31 = vpack.c.bf16 %v1148_v28, %v1147_v26 }
 0x162   : > { %v1073_v32 = vmul.f32 %v956_v30, %v956_v30  ;;  %v958_v33 = vpop.f32.mrb[37].mxu0 }
 0x163   : > { %v1111_v35 = vmul.f32 %v958_v33, %v958_v33  ;;  %v960_v36 = vpop.f32.mrb[38].mxu0  ;;  %1772 = vmatmul.mubr.bf16.gmra.mrb[32].mxu1 %v1177_v31 }
 0x164   : > { %v1074_v38 = vmul.f32 %v960_v36, %v960_v36  ;;  %v962_v39 = vpop.f32.mrb[39].mxu0  ;;  %1775 = vmatprep.mubr.msk.bf16.mxu1 %vm2005_vm1, %v2004_v15 }
 0x165   : > { %v1149_v40 = vadd.f32 %v1111_v35, %v1073_v32  ;;  %v1112_v41 = vmul.f32 %v962_v39, %v962_v39 }
 0x167   : > { %v1150_v34 = vadd.f32 %v1112_v41, %v1074_v38 }
 0x169   : > { %v966_v42 = vpop.f32.mrb[40].mxu0  ;;  %v1178_v43 = vpack.c.bf16 %v1150_v34, %v1149_v40 }
 0x16a   : > { %v1075_v44 = vmul.f32 %v966_v42, %v966_v42  ;;  %v968_v46 = vpop.f32.mrb[41].mxu0 }
 0x16b   : > { %v1113_v47 = vmul.f32 %v968_v46, %v968_v46  ;;  %v970_v48 = vpop.f32.mrb[42].mxu0  ;;  %1776 = vmatmul.mubr.bf16.gmra.mrb[36].mxu1 %v1178_v43 }
 0x16c   : > { %v1076_v49 = vmul.f32 %v970_v48, %v970_v48  ;;  %v972_v54 = vpop.f32.mrb[43].mxu0  ;;  %1779 = vmatprep.mubr.msk.bf16.mxu1 %vm2005_vm1, %v2004_v15 }
 0x16d   : > { %v1151_v60 = vadd.f32 %v1113_v47, %v1075_v44  ;;  %v1114_v3 = vmul.f32 %v972_v54, %v972_v54 }
 0x16f   : > { %v1152_v12 = vadd.f32 %v1114_v3, %v1076_v49 }
 0x171   : > { %v976_v20 = vpop.f32.mrb[44].mxu0  ;;  %v1179_v29 = vpack.c.bf16 %v1152_v12, %v1151_v60 }
 0x172   : > { %v1077_v37 = vmul.f32 %v976_v20, %v976_v20  ;;  %v978_v50 = vpop.f32.mrb[45].mxu0 }
 0x173   : > { %v1115_v51 = vmul.f32 %v978_v50, %v978_v50  ;;  %v980_v45 = vpop.f32.mrb[46].mxu0  ;;  %1780 = vmatmul.mubr.bf16.gmra.mrb[40].mxu1 %v1179_v29 }
 0x174   : > { %v1078_v52 = vmul.f32 %v980_v45, %v980_v45  ;;  %v982_v53 = vpop.f32.mrb[47].mxu0  ;;  %1783 = vmatprep.mubr.msk.bf16.mxu1 %vm2005_vm1, %v2004_v15 }
 0x175   : > { %v1153_v55 = vadd.f32 %v1115_v51, %v1077_v37  ;;  %v1116_v56 = vmul.f32 %v982_v53, %v982_v53 }
 0x177   : > { %v1154_v57 = vadd.f32 %v1116_v56, %v1078_v52 }
 0x179   : > { %v986_v58 = vpop.f32.mrb[48].mxu0  ;;  %v1180_v59 = vpack.c.bf16 %v1154_v57, %v1153_v55 }
 0x17a   : > { %v1079_v61 = vmul.f32 %v986_v58, %v986_v58  ;;  %v988_v62 = vpop.f32.mrb[49].mxu0 }
 0x17b   : > { %v1117_v63 = vmul.f32 %v988_v62, %v988_v62  ;;  %v990_v0 = vpop.f32.mrb[50].mxu0  ;;  %1784 = vmatmul.mubr.bf16.gmra.mrb[44].mxu1 %v1180_v59 }
 0x17c   : > { %v1080_v22 = vmul.f32 %v990_v0, %v990_v0  ;;  %v992_v1 = vpop.f32.mrb[51].mxu0  ;;  %1787 = vmatprep.mubr.msk.bf16.mxu1 %vm2005_vm1, %v2004_v15 }
 0x17d   : > { %v1155_v2 = vadd.f32 %v1117_v63, %v1079_v61  ;;  %v1118_v4 = vmul.f32 %v992_v1, %v992_v1 }
 0x17f   : > { %v1156_v5 = vadd.f32 %v1118_v4, %v1080_v22 }
 0x181   : > { %v996_v6 = vpop.f32.mrb[52].mxu0  ;;  %v1181_v7 = vpack.c.bf16 %v1156_v5, %v1155_v2 }
 0x182   : > { %v1081_v8 = vmul.f32 %v996_v6, %v996_v6  ;;  %v998_v9 = vpop.f32.mrb[53].mxu0 }
 0x183   : > { %v1119_v10 = vmul.f32 %v998_v9, %v998_v9  ;;  %v1000_v11 = vpop.f32.mrb[54].mxu0  ;;  %1788 = vmatmul.mubr.bf16.gmra.mrb[48].mxu1 %v1181_v7 }
 0x184   : > { %v1082_v13 = vmul.f32 %v1000_v11, %v1000_v11  ;;  %v1002_v14 = vpop.f32.mrb[55].mxu0  ;;  %1791 = vmatprep.mubr.msk.bf16.mxu1 %vm2005_vm1, %v2004_v15 }
 0x185   : > { %v1157_v16 = vadd.f32 %v1119_v10, %v1081_v8  ;;  %v1120_v17 = vmul.f32 %v1002_v14, %v1002_v14 }
 0x187   : > { %v1158_v18 = vadd.f32 %v1120_v17, %v1082_v13 }
 0x189   : > { %v1006_v19 = vpop.f32.mrb[56].mxu0  ;;  %v1182_v21 = vpack.c.bf16 %v1158_v18, %v1157_v16 }
 0x18a   : > { %v1083_v23 = vmul.f32 %v1006_v19, %v1006_v19  ;;  %v1008_v24 = vpop.f32.mrb[57].mxu0 }
 0x18b   : > { %v1121_v25 = vmul.f32 %v1008_v24, %v1008_v24  ;;  %v1010_v26 = vpop.f32.mrb[58].mxu0  ;;  %1792 = vmatmul.mubr.bf16.gmra.mrb[52].mxu1 %v1182_v21 }
 0x18c   : > { %v1084_v27 = vmul.f32 %v1010_v26, %v1010_v26  ;;  %v1012_v28 = vpop.f32.mrb[59].mxu0  ;;  %1795 = vmatprep.mubr.msk.bf16.mxu1 %vm2005_vm1, %v2004_v15 }
 0x18d   : > { %v1159_v30 = vadd.f32 %v1121_v25, %v1083_v23  ;;  %v1122_v31 = vmul.f32 %v1012_v28, %v1012_v28 }
 0x18f   : > { %v1160_v32 = vadd.f32 %v1122_v31, %v1084_v27 }
 0x191   : > { %v1016_v33 = vpop.f32.mrb[60].mxu0  ;;  %v1183_v35 = vpack.c.bf16 %v1160_v32, %v1159_v30 }
 0x192   : > { %v1085_v36 = vmul.f32 %v1016_v33, %v1016_v33  ;;  %v1018_v38 = vpop.f32.mrb[61].mxu0 }
 0x193   : > { %v1123_v39 = vmul.f32 %v1018_v38, %v1018_v38  ;;  %v1020_v40 = vpop.f32.mrb[62].mxu0  ;;  %1796 = vmatmul.mubr.bf16.gmra.mrb[56].mxu1 %v1183_v35 }
 0x194   : > { %v1086_v41 = vmul.f32 %v1020_v40, %v1020_v40  ;;  %v1022_v34 = vpop.f32.mrb[63].mxu0  ;;  %1799 = vmatprep.mubr.msk.bf16.mxu1 %vm2005_vm1, %v2004_v15 }
 0x195   : > { %v1161_v42 = vadd.f32 %v1123_v39, %v1085_v36  ;;  %v1124_v43 = vmul.f32 %v1022_v34, %v1022_v34 }
 0x197   : > { %v1162_v44 = vadd.f32 %v1124_v43, %v1086_v41 }
 0x199   : > { %v1026_v46 = vpop.f32.mrb[64].mxu0  ;;  %v1184_v47 = vpack.c.bf16 %v1162_v44, %v1161_v42 }
 0x19a   : > { %v1087_v48 = vmul.f32 %v1026_v46, %v1026_v46  ;;  %v1028_v49 = vpop.f32.mrb[65].mxu0 }
 0x19b   : > { %v1125_v54 = vmul.f32 %v1028_v49, %v1028_v49  ;;  %v1030_v60 = vpop.f32.mrb[66].mxu0  ;;  %1800 = vmatmul.mubr.bf16.gmra.mrb[60].mxu1 %v1184_v47 }
 0x19c   : > { %v1088_v3 = vmul.f32 %v1030_v60, %v1030_v60  ;;  %v1032_v12 = vpop.f32.mrb[67].mxu0  ;;  %1803 = vmatprep.mubr.msk.bf16.mxu1 %vm2005_vm1, %v2004_v15 }
 0x19d   : > { %v1163_v20 = vadd.f32 %v1125_v54, %v1087_v48  ;;  %v1126_v29 = vmul.f32 %v1032_v12, %v1032_v12 }
 0x19f   : > { %v1164_v37 = vadd.f32 %v1126_v29, %v1088_v3 }
 0x1a1   : > { %v1036_v50 = vpop.f32.mrb[68].mxu0  ;;  %v1185_v51 = vpack.c.bf16 %v1164_v37, %v1163_v20 }
 0x1a2   : > { %v1089_v45 = vmul.f32 %v1036_v50, %v1036_v50  ;;  %v1038_v52 = vpop.f32.mrb[69].mxu0 }
 0x1a3   : > { %v1127_v53 = vmul.f32 %v1038_v52, %v1038_v52  ;;  %v1040_v55 = vpop.f32.mrb[70].mxu0  ;;  %1804 = vmatmul.mubr.bf16.gmra.mrb[64].mxu1 %v1185_v51 }
 0x1a4   : > { %v1090_v56 = vmul.f32 %v1040_v55, %v1040_v55  ;;  %v1042_v57 = vpop.f32.mrb[71].mxu0  ;;  %1807 = vmatprep.mubr.msk.bf16.mxu1 %vm2005_vm1, %v2004_v15 }
 0x1a5   : > { %v1165_v58 = vadd.f32 %v1127_v53, %v1089_v45  ;;  %v1128_v59 = vmul.f32 %v1042_v57, %v1042_v57 }
 0x1a7   : > { %v1166_v61 = vadd.f32 %v1128_v59, %v1090_v56 }
 0x1a9   : > { %v1046_v62 = vpop.f32.mrb[72].mxu0  ;;  %v1186_v63 = vpack.c.bf16 %v1166_v61, %v1165_v58 }
 0x1aa   : > { %v1091_v0 = vmul.f32 %v1046_v62, %v1046_v62  ;;  %v1048_v22 = vpop.f32.mrb[73].mxu0 }
 0x1ab   : > { %v1129_v1 = vmul.f32 %v1048_v22, %v1048_v22  ;;  %v1050_v2 = vpop.f32.mrb[74].mxu0  ;;  %1808 = vmatmul.mubr.bf16.gmra.mrb[68].mxu1 %v1186_v63 }
 0x1ac   : > { %v1092_v4 = vmul.f32 %v1050_v2, %v1050_v2  ;;  %v1052_v5 = vpop.f32.mrb[75].mxu0  ;;  %1811 = vmatprep.mubr.msk.bf16.mxu1 %vm2005_vm1, %v2004_v15 }
 0x1ad   : > { %v1167_v6 = vadd.f32 %v1129_v1, %v1091_v0  ;;  %v1130_v7 = vmul.f32 %v1052_v5, %v1052_v5 }
 0x1af   : > { %v1168_v8 = vadd.f32 %v1130_v7, %v1092_v4 }
 0x1b1   : > { %v1187_v9 = vpack.c.bf16 %v1168_v8, %v1167_v6 }
 0x1b3   : > { %1812 = vmatmul.mubr.bf16.gmra.mrb[72].mxu1 %v1187_v9 }
 0x1f6   : > { %v1286_v10 = vpop.f32.mrb[0].mxu1 }
 0x1f7   : > { %v1287_v11 = vadd.f32 1e-06, %v1286_v10  ;;  %v1741_v13 = vpop.f32.mrb[1].mxu1 }
 0x1f8   : > { %v1289_v14 = vpop.f32.mrb[2].mxu1 }
 0x1f9   : > { %1920 = vlog2.f32 %v1287_v11  ;;  %v1290_v16 = vadd.f32 1e-06, %v1289_v14  ;;  %v1742_v17 = vpop.f32.mrb[3].mxu1 }
 0x1fb   : > { %1922 = vlog2.f32 %v1290_v16 }
 0x1fe   : > { %v1294_v18 = vpop.f32.mrb[4].mxu1 }
 0x1ff   : > { %v1295_v19 = vadd.f32 1e-06, %v1294_v18  ;;  %v1745_v15 = vpop.f32.mrb[5].mxu1 }
 0x200   : > { %v1297_v21 = vpop.f32.mrb[6].mxu1 }
 0x201   : > { %1924 = vlog2.f32 %v1295_v19  ;;  %v1298_v23 = vadd.f32 1e-06, %v1297_v21  ;;  %v1746_v24 = vpop.f32.mrb[7].mxu1 }
 0x203   : > { %v1921_v25 = vpop.eup %1920  ;;  %1926 = vlog2.f32 %v1298_v23 }
 0x204   : > { %v1438_v26 = vmul.f32 0.6931472, %v1921_v25 }
 0x205   : > { %v1923_v27 = vpop.eup %1922 }
 0x206   : > { %1514 = vst.msk [vmem:[%s2328_s28] sm:$0xff] %vm1513_vm2, %v1438_v26  ;;  %v1440_v28 = vmul.f32 0.6931472, %v1923_v27  ;;  %v1302_v30 = vpop.f32.mrb[8].mxu1 }
 0x207   : > { %v1303_v31 = vadd.f32 1e-06, %v1302_v30  ;;  %v1749_v32 = vpop.f32.mrb[9].mxu1 }
 0x208   : > { %1515 = vst.msk [vmem:[%s2328_s28 + $0x8] sm:$0xff] %vm1513_vm2, %v1440_v28  ;;  %v1305_v33 = vpop.f32.mrb[10].mxu1 }
 0x209   : > { %1928 = vlog2.f32 %v1303_v31  ;;  %v1306_v35 = vadd.f32 1e-06, %v1305_v33  ;;  %v1750_v36 = vpop.f32.mrb[11].mxu1 }
 0x20b   : > { %v1925_v38 = vpop.eup %1924  ;;  %1930 = vlog2.f32 %v1306_v35 }
 0x20c   : > { %v1442_v39 = vmul.f32 0.6931472, %v1925_v38 }
 0x20d   : > { %v1927_v40 = vpop.eup %1926 }
 0x20e   : > { %1516 = vst.msk [vmem:[%s2328_s28 + $0x10] sm:$0xff] %vm1513_vm2, %v1442_v39  ;;  %v1444_v41 = vmul.f32 0.6931472, %v1927_v40  ;;  %v1310_v34 = vpop.f32.mrb[12].mxu1 }
 0x20f   : > { %v1311_v42 = vadd.f32 1e-06, %v1310_v34  ;;  %v1753_v43 = vpop.f32.mrb[13].mxu1 }
 0x210   : > { %1517 = vst.msk [vmem:[%s2328_s28 + $0x18] sm:$0xff] %vm1513_vm2, %v1444_v41  ;;  %v1313_v44 = vpop.f32.mrb[14].mxu1 }
 0x211   : > { %1932 = vlog2.f32 %v1311_v42  ;;  %v1314_v46 = vadd.f32 1e-06, %v1313_v44  ;;  %v1754_v47 = vpop.f32.mrb[15].mxu1 }
 0x213   : > { %v1929_v48 = vpop.eup %1928  ;;  %1934 = vlog2.f32 %v1314_v46 }
 0x214   : > { %v1446_v49 = vmul.f32 0.6931472, %v1929_v48 }
 0x215   : > { %v1931_v54 = vpop.eup %1930 }
 0x216   : > { %1518 = vst.msk [vmem:[%s2328_s28 + $0x20] sm:$0xff] %vm1513_vm2, %v1446_v49  ;;  %v1448_v60 = vmul.f32 0.6931472, %v1931_v54  ;;  %v1318_v3 = vpop.f32.mrb[16].mxu1 }
 0x217   : > { %v1319_v12 = vadd.f32 1e-06, %v1318_v3  ;;  %v1757_v20 = vpop.f32.mrb[17].mxu1 }
 0x218   : > { %1519 = vst.msk [vmem:[%s2328_s28 + $0x28] sm:$0xff] %vm1513_vm2, %v1448_v60  ;;  %v1321_v29 = vpop.f32.mrb[18].mxu1 }
 0x219   : > { %1936 = vlog2.f32 %v1319_v12  ;;  %v1322_v37 = vadd.f32 1e-06, %v1321_v29  ;;  %v1758_v50 = vpop.f32.mrb[19].mxu1 }
 0x21b   : > { %v1933_v51 = vpop.eup %1932  ;;  %1938 = vlog2.f32 %v1322_v37 }
 0x21c   : > { %v1450_v45 = vmul.f32 0.6931472, %v1933_v51 }
 0x21d   : > { %v1935_v52 = vpop.eup %1934 }
 0x21e   : > { %1520 = vst.msk [vmem:[%s2328_s28 + $0x30] sm:$0xff] %vm1513_vm2, %v1450_v45  ;;  %v1452_v53 = vmul.f32 0.6931472, %v1935_v52  ;;  %v1326_v55 = vpop.f32.mrb[20].mxu1 }
 0x21f   : > { %v1327_v56 = vadd.f32 1e-06, %v1326_v55  ;;  %v1761_v57 = vpop.f32.mrb[21].mxu1 }
 0x220   : > { %1521 = vst.msk [vmem:[%s2328_s28 + $0x38] sm:$0xff] %vm1513_vm2, %v1452_v53  ;;  %v1329_v58 = vpop.f32.mrb[22].mxu1 }
 0x221   : > { %1940 = vlog2.f32 %v1327_v56  ;;  %v1330_v59 = vadd.f32 1e-06, %v1329_v58  ;;  %v1762_v61 = vpop.f32.mrb[23].mxu1 }
 0x223   : > { %v1937_v62 = vpop.eup %1936  ;;  %1942 = vlog2.f32 %v1330_v59 }
 0x224   : > { %v1454_v63 = vmul.f32 0.6931472, %v1937_v62 }
 0x225   : > { %v1939_v0 = vpop.eup %1938 }
 0x226   : > { %1522 = vst.msk [vmem:[%s2328_s28 + $0x40] sm:$0xff] %vm1513_vm2, %v1454_v63  ;;  %v1456_v22 = vmul.f32 0.6931472, %v1939_v0  ;;  %v1334_v1 = vpop.f32.mrb[24].mxu1 }
 0x227   : > { %v1335_v2 = vadd.f32 1e-06, %v1334_v1  ;;  %v1765_v4 = vpop.f32.mrb[25].mxu1 }
 0x228   : > { %1523 = vst.msk [vmem:[%s2328_s28 + $0x48] sm:$0xff] %vm1513_vm2, %v1456_v22  ;;  %v1337_v5 = vpop.f32.mrb[26].mxu1 }
 0x229   : > { %1944 = vlog2.f32 %v1335_v2  ;;  %v1338_v6 = vadd.f32 1e-06, %v1337_v5  ;;  %v1766_v7 = vpop.f32.mrb[27].mxu1 }
 0x22b   : > { %v1941_v8 = vpop.eup %1940  ;;  %1946 = vlog2.f32 %v1338_v6 }
 0x22c   : > { %v1458_v9 = vmul.f32 0.6931472, %v1941_v8 }
 0x22d   : > { %v1943_v10 = vpop.eup %1942 }
 0x22e   : > { %1524 = vst.msk [vmem:[%s2328_s28 + $0x50] sm:$0xff] %vm1513_vm2, %v1458_v9  ;;  %v1460_v11 = vmul.f32 0.6931472, %v1943_v10  ;;  %v1342_v13 = vpop.f32.mrb[28].mxu1 }
 0x22f   : > { %v1343_v14 = vadd.f32 1e-06, %v1342_v13  ;;  %v1769_v16 = vpop.f32.mrb[29].mxu1 }
 0x230   : > { %1525 = vst.msk [vmem:[%s2328_s28 + $0x58] sm:$0xff] %vm1513_vm2, %v1460_v11  ;;  %v1345_v17 = vpop.f32.mrb[30].mxu1 }
 0x231   : > { %1948 = vlog2.f32 %v1343_v14  ;;  %v1346_v18 = vadd.f32 1e-06, %v1345_v17  ;;  %v1770_v19 = vpop.f32.mrb[31].mxu1 }
 0x233   : > { %v1945_v15 = vpop.eup %1944  ;;  %1950 = vlog2.f32 %v1346_v18 }
 0x234   : > { %v1462_v21 = vmul.f32 0.6931472, %v1945_v15 }
 0x235   : > { %v1947_v23 = vpop.eup %1946 }
 0x236   : > { %1526 = vst.msk [vmem:[%s2328_s28 + $0x60] sm:$0xff] %vm1513_vm2, %v1462_v21  ;;  %v1464_v24 = vmul.f32 0.6931472, %v1947_v23  ;;  %v1350_v25 = vpop.f32.mrb[32].mxu1 }
 0x237   : > { %v1351_v26 = vadd.f32 1e-06, %v1350_v25  ;;  %v1773_v27 = vpop.f32.mrb[33].mxu1 }
 0x238   : > { %1527 = vst.msk [vmem:[%s2328_s28 + $0x68] sm:$0xff] %vm1513_vm2, %v1464_v24  ;;  %v1353_v28 = vpop.f32.mrb[34].mxu1 }
 0x239   : > { %1952 = vlog2.f32 %v1351_v26  ;;  %v1354_v30 = vadd.f32 1e-06, %v1353_v28  ;;  %v1774_v31 = vpop.f32.mrb[35].mxu1 }
 0x23b   : > { %v1949_v32 = vpop.eup %1948  ;;  %1954 = vlog2.f32 %v1354_v30 }
 0x23c   : > { %v1466_v33 = vmul.f32 0.6931472, %v1949_v32 }
 0x23d   : > { %v1951_v35 = vpop.eup %1950 }
 0x23e   : > { %1528 = vst.msk [vmem:[%s2328_s28 + $0x70] sm:$0xff] %vm1513_vm2, %v1466_v33  ;;  %v1468_v36 = vmul.f32 0.6931472, %v1951_v35  ;;  %v1358_v38 = vpop.f32.mrb[36].mxu1 }
 0x23f   : > { %v1359_v39 = vadd.f32 1e-06, %v1358_v38  ;;  %v1777_v40 = vpop.f32.mrb[37].mxu1 }
 0x240   : > { %1529 = vst.msk [vmem:[%s2328_s28 + $0x78] sm:$0xff] %vm1513_vm2, %v1468_v36  ;;  %v1361_v41 = vpop.f32.mrb[38].mxu1 }
 0x241   : > { %1956 = vlog2.f32 %v1359_v39  ;;  %v1362_v34 = vadd.f32 1e-06, %v1361_v41  ;;  %v1778_v42 = vpop.f32.mrb[39].mxu1 }
 0x243   : > { %v1953_v43 = vpop.eup %1952  ;;  %1958 = vlog2.f32 %v1362_v34 }
 0x244   : > { %v1470_v44 = vmul.f32 0.6931472, %v1953_v43 }
 0x245   : > { %v1955_v46 = vpop.eup %1954 }
 0x246   : > { %1530 = vst.msk [vmem:[%s2328_s28 + $0x80] sm:$0xff] %vm1513_vm2, %v1470_v44  ;;  %v1472_v47 = vmul.f32 0.6931472, %v1955_v46  ;;  %v1366_v48 = vpop.f32.mrb[40].mxu1 }
 0x247   : > { %v1367_v49 = vadd.f32 1e-06, %v1366_v48  ;;  %v1781_v54 = vpop.f32.mrb[41].mxu1 }
 0x248   : > { %1531 = vst.msk [vmem:[%s2328_s28 + $0x88] sm:$0xff] %vm1513_vm2, %v1472_v47  ;;  %v1369_v60 = vpop.f32.mrb[42].mxu1 }
 0x249   : > { %1960 = vlog2.f32 %v1367_v49  ;;  %v1370_v3 = vadd.f32 1e-06, %v1369_v60  ;;  %v1782_v12 = vpop.f32.mrb[43].mxu1 }
 0x24b   : > { %v1957_v20 = vpop.eup %1956  ;;  %1962 = vlog2.f32 %v1370_v3 }
 0x24c   : > { %v1474_v29 = vmul.f32 0.6931472, %v1957_v20 }
 0x24d   : > { %v1959_v37 = vpop.eup %1958 }
 0x24e   : > { %1532 = vst.msk [vmem:[%s2328_s28 + $0x90] sm:$0xff] %vm1513_vm2, %v1474_v29  ;;  %v1476_v50 = vmul.f32 0.6931472, %v1959_v37  ;;  %v1374_v51 = vpop.f32.mrb[44].mxu1 }
 0x24f   : > { %v1375_v45 = vadd.f32 1e-06, %v1374_v51  ;;  %v1785_v52 = vpop.f32.mrb[45].mxu1 }
 0x250   : > { %1533 = vst.msk [vmem:[%s2328_s28 + $0x98] sm:$0xff] %vm1513_vm2, %v1476_v50  ;;  %v1377_v53 = vpop.f32.mrb[46].mxu1 }
 0x251   : > { %1964 = vlog2.f32 %v1375_v45  ;;  %v1378_v55 = vadd.f32 1e-06, %v1377_v53  ;;  %v1786_v56 = vpop.f32.mrb[47].mxu1 }
 0x253   : > { %v1961_v57 = vpop.eup %1960  ;;  %1966 = vlog2.f32 %v1378_v55 }
 0x254   : > { %v1478_v58 = vmul.f32 0.6931472, %v1961_v57 }
 0x255   : > { %v1963_v59 = vpop.eup %1962 }
 0x256   : > { %1534 = vst.msk [vmem:[%s2328_s28 + $0xa0] sm:$0xff] %vm1513_vm2, %v1478_v58  ;;  %v1480_v61 = vmul.f32 0.6931472, %v1963_v59  ;;  %v1382_v62 = vpop.f32.mrb[48].mxu1 }
 0x257   : > { %v1383_v63 = vadd.f32 1e-06, %v1382_v62  ;;  %v1789_v0 = vpop.f32.mrb[49].mxu1 }
 0x258   : > { %1535 = vst.msk [vmem:[%s2328_s28 + $0xa8] sm:$0xff] %vm1513_vm2, %v1480_v61  ;;  %v1385_v22 = vpop.f32.mrb[50].mxu1 }
 0x259   : > { %1968 = vlog2.f32 %v1383_v63  ;;  %v1386_v1 = vadd.f32 1e-06, %v1385_v22  ;;  %v1790_v2 = vpop.f32.mrb[51].mxu1 }
 0x25b   : > { %v1965_v4 = vpop.eup %1964  ;;  %1970 = vlog2.f32 %v1386_v1 }
 0x25c   : > { %v1482_v5 = vmul.f32 0.6931472, %v1965_v4 }
 0x25d   : > { %v1967_v6 = vpop.eup %1966 }
 0x25e   : > { %1536 = vst.msk [vmem:[%s2328_s28 + $0xb0] sm:$0xff] %vm1513_vm2, %v1482_v5  ;;  %v1484_v7 = vmul.f32 0.6931472, %v1967_v6  ;;  %v1390_v8 = vpop.f32.mrb[52].mxu1 }
 0x25f   : > { %v1391_v9 = vadd.f32 1e-06, %v1390_v8  ;;  %v1793_v10 = vpop.f32.mrb[53].mxu1 }
 0x260   : > { %1537 = vst.msk [vmem:[%s2328_s28 + $0xb8] sm:$0xff] %vm1513_vm2, %v1484_v7  ;;  %v1393_v11 = vpop.f32.mrb[54].mxu1 }
 0x261   : > { %1972 = vlog2.f32 %v1391_v9  ;;  %v1394_v13 = vadd.f32 1e-06, %v1393_v11  ;;  %v1794_v14 = vpop.f32.mrb[55].mxu1 }
 0x263   : > { %v1969_v16 = vpop.eup %1968  ;;  %1974 = vlog2.f32 %v1394_v13 }
 0x264   : > { %v1486_v17 = vmul.f32 0.6931472, %v1969_v16 }
 0x265   : > { %v1971_v18 = vpop.eup %1970 }
 0x266   : > { %1538 = vst.msk [vmem:[%s2328_s28 + $0xc0] sm:$0xff] %vm1513_vm2, %v1486_v17  ;;  %v1488_v19 = vmul.f32 0.6931472, %v1971_v18  ;;  %v1398_v15 = vpop.f32.mrb[56].mxu1 }
 0x267   : > { %v1399_v21 = vadd.f32 1e-06, %v1398_v15  ;;  %v1797_v23 = vpop.f32.mrb[57].mxu1 }
 0x268   : > { %1539 = vst.msk [vmem:[%s2328_s28 + $0xc8] sm:$0xff] %vm1513_vm2, %v1488_v19  ;;  %v1401_v24 = vpop.f32.mrb[58].mxu1 }
 0x269   : > { %1976 = vlog2.f32 %v1399_v21  ;;  %v1402_v25 = vadd.f32 1e-06, %v1401_v24  ;;  %v1798_v26 = vpop.f32.mrb[59].mxu1 }
 0x26b   : > { %v1973_v27 = vpop.eup %1972  ;;  %1978 = vlog2.f32 %v1402_v25 }
 0x26c   : > { %v1490_v28 = vmul.f32 0.6931472, %v1973_v27 }
 0x26d   : > { %v1975_v30 = vpop.eup %1974 }
 0x26e   : > { %1540 = vst.msk [vmem:[%s2328_s28 + $0xd0] sm:$0xff] %vm1513_vm2, %v1490_v28  ;;  %v1492_v31 = vmul.f32 0.6931472, %v1975_v30  ;;  %v1406_v32 = vpop.f32.mrb[60].mxu1 }
 0x26f   : > { %v1407_v33 = vadd.f32 1e-06, %v1406_v32  ;;  %v1801_v35 = vpop.f32.mrb[61].mxu1 }
 0x270   : > { %1541 = vst.msk [vmem:[%s2328_s28 + $0xd8] sm:$0xff] %vm1513_vm2, %v1492_v31  ;;  %v1409_v36 = vpop.f32.mrb[62].mxu1 }
 0x271   : > { %1980 = vlog2.f32 %v1407_v33  ;;  %v1410_v38 = vadd.f32 1e-06, %v1409_v36  ;;  %v1802_v39 = vpop.f32.mrb[63].mxu1 }
 0x273   : > { %v1977_v40 = vpop.eup %1976  ;;  %1982 = vlog2.f32 %v1410_v38 }
 0x274   : > { %v1494_v41 = vmul.f32 0.6931472, %v1977_v40 }
 0x275   : > { %v1979_v34 = vpop.eup %1978 }
 0x276   : > { %1542 = vst.msk [vmem:[%s2328_s28 + $0xe0] sm:$0xff] %vm1513_vm2, %v1494_v41  ;;  %v1496_v42 = vmul.f32 0.6931472, %v1979_v34  ;;  %v1414_v43 = vpop.f32.mrb[64].mxu1 }
 0x277   : > { %v1415_v44 = vadd.f32 1e-06, %v1414_v43  ;;  %v1805_v46 = vpop.f32.mrb[65].mxu1 }
 0x278   : > { %1543 = vst.msk [vmem:[%s2328_s28 + $0xe8] sm:$0xff] %vm1513_vm2, %v1496_v42  ;;  %v1417_v47 = vpop.f32.mrb[66].mxu1 }
 0x279   : > { %1984 = vlog2.f32 %v1415_v44  ;;  %v1418_v48 = vadd.f32 1e-06, %v1417_v47  ;;  %v1806_v49 = vpop.f32.mrb[67].mxu1 }
 0x27b   : > { %v1981_v54 = vpop.eup %1980  ;;  %1986 = vlog2.f32 %v1418_v48 }
 0x27c   : > { %v1498_v60 = vmul.f32 0.6931472, %v1981_v54 }
 0x27d   : > { %v1983_v3 = vpop.eup %1982 }
 0x27e   : > { %1544 = vst.msk [vmem:[%s2328_s28 + $0xf0] sm:$0xff] %vm1513_vm2, %v1498_v60  ;;  %v1500_v12 = vmul.f32 0.6931472, %v1983_v3  ;;  %v1422_v20 = vpop.f32.mrb[68].mxu1 }
 0x27f   : > { %v1423_v29 = vadd.f32 1e-06, %v1422_v20  ;;  %v1809_v37 = vpop.f32.mrb[69].mxu1 }
 0x280   : > { %1545 = vst.msk [vmem:[%s2328_s28 + $0xf8] sm:$0xff] %vm1513_vm2, %v1500_v12  ;;  %v1425_v50 = vpop.f32.mrb[70].mxu1 }
 0x281   : > { %1988 = vlog2.f32 %v1423_v29  ;;  %v1426_v51 = vadd.f32 1e-06, %v1425_v50  ;;  %v1810_v45 = vpop.f32.mrb[71].mxu1 }
 0x283   : > { %v1985_v52 = vpop.eup %1984  ;;  %1990 = vlog2.f32 %v1426_v51 }
 0x284   : > { %v1502_v53 = vmul.f32 0.6931472, %v1985_v52 }
 0x285   : > { %v1987_v55 = vpop.eup %1986 }
 0x286   : > { %1546 = vst.msk [vmem:[%s2328_s28 + $0x100] sm:$0xff] %vm1513_vm2, %v1502_v53  ;;  %v1504_v56 = vmul.f32 0.6931472, %v1987_v55  ;;  %v1430_v57 = vpop.f32.mrb[72].mxu1 }
 0x287   : > { %v1431_v58 = vadd.f32 1e-06, %v1430_v57  ;;  %v1813_v59 = vpop.f32.mrb[73].mxu1 }
 0x288   : > { %1547 = vst.msk [vmem:[%s2328_s28 + $0x108] sm:$0xff] %vm1513_vm2, %v1504_v56  ;;  %v1433_v61 = vpop.f32.mrb[74].mxu1 }
 0x289   : > { %1992 = vlog2.f32 %v1431_v58  ;;  %v1434_v62 = vadd.f32 1e-06, %v1433_v61  ;;  %v1814_v63 = vpop.f32.mrb[75].mxu1 }
 0x28b   : > { %v1989_v0 = vpop.eup %1988  ;;  %1994 = vlog2.f32 %v1434_v62 }
 0x28c   : > { %v1506_v22 = vmul.f32 0.6931472, %v1989_v0 }
 0x28d   : > { %v1991_v1 = vpop.eup %1990 }
 0x28e   : > { %1548 = vst.msk [vmem:[%s2328_s28 + $0x110] sm:$0xff] %vm1513_vm2, %v1506_v22  ;;  %v1508_v2 = vmul.f32 0.6931472, %v1991_v1 }
 0x290   : > { %1549 = vst.msk [vmem:[%s2328_s28 + $0x118] sm:$0xff] %vm1513_vm2, %v1508_v2 }
 0x293   : > { %v1993_v4 = vpop.eup %1992 }
 0x294   : > { %v1510_v5 = vmul.f32 0.6931472, %v1993_v4 }
 0x295   : > { %v1995_v6 = vpop.eup %1994 }
 0x296   : > { %1550 = vst.msk [vmem:[%s2328_s28 + $0x120] sm:$0xff] %vm1513_vm2, %v1510_v5  ;;  %v1512_v7 = vmul.f32 0.6931472, %v1995_v6 }
 0x298   : > { %1551 = vst.msk [vmem:[%s2328_s28 + $0x128] sm:$0xff] %vm1513_vm2, %v1512_v7 }
 0x299 PF: > { %s13_s12 = sadd.s32 1, %s2002_s12  }
 0x29a   : > { %p10_p5 = scmp.ge.s32.totalorder %s13_s12, 4  }
 0x29c   :  { %12 = sbr.rel (!%p10_p5) target bundleno = 1 (0x1), region = 62 }

</bundles_post_ra>
